<compile_context>
chip_gen: v7x
topology: tpu7x:2x2x1
jax: 0.10.0
libtpu: 0.0.40
codegen_flags: <defaults>
</compile_context>

<pallas_src>
import functools

import jax
import jax.numpy as jnp
from jax.experimental import pallas as pl
from jax.experimental.pallas import tpu as pltpu


def _round_up(x, m):
    return ((x + m - 1) // m) * m


# ----------------------------------------------------------------------------
# Kernel
# ----------------------------------------------------------------------------
def _make_kernel(num_hidden, activation, obs_dim, obs_pad, mxu_bf16):
    if activation == "silu":
        def act(h):
            return h * jax.nn.sigmoid(h)      # EUP sigmoid + VPU mul, f32
    elif activation == "relu":
        def act(h):
            return jnp.maximum(h, 0.0)
    else:
        raise NotImplementedError(activation)

    mxu_dtype = jnp.bfloat16 if mxu_bf16 else jnp.float32

    def kernel(o_ref, w0_ref, b0_ref, wh_ref, bh_ref, wf_ref, bf_ref, out_ref):
        # o_ref:   [tb, obs_dim]           un-padded observations
        # w0_ref:  [obs_pad, Fh]           fused layer-0 weights (q1 | q2 cols)
        # b0_ref:  [1, Fh]
        # wh_ref:  [Lh, Fh, Fh]            block-diagonal hidden weights
        # bh_ref:  [Lh, 1, Fh]
        # wf_ref:  [Fh, Fo]                block-diagonal final weights
        # bf_ref:  [1, Fo]
        # out_ref: [tb, Fo]                lane-dense fused output (q1 | q2 | 0)
        h = o_ref[...].astype(jnp.float32)
        if obs_pad != obs_dim:
            # Cheap in-VMEM lane pad of the activations (never touches HBM).
            h = jnp.pad(h, ((0, 0), (0, obs_pad - obs_dim)))

        # Layer 0: obs -> fused 2H lanes.
        h = jnp.dot(h.astype(mxu_dtype), w0_ref[...].astype(mxu_dtype),
                    preferred_element_type=jnp.float32) + b0_ref[...]
        h = act(h)

        # Hidden layers: block-diagonal 2H -> 2H, one dot each (static unroll).
        for i in range(num_hidden):
            h = jnp.dot(h.astype(mxu_dtype), wh_ref[i].astype(mxu_dtype),
                        preferred_element_type=jnp.float32) + bh_ref[i]
            h = act(h)

        # Final layer: block-diagonal 2H -> 2*act_dim (no activation).
        out = jnp.dot(h.astype(mxu_dtype), wf_ref[...].astype(mxu_dtype),
                      preferred_element_type=jnp.float32) + bf_ref[...]
        out_ref[...] = out.astype(out_ref.dtype)

    return kernel


# ----------------------------------------------------------------------------
# Parameter init / packing
# ----------------------------------------------------------------------------
def init_mlp_params(key, input_dim, output_dim, hidden_dim, num_hidden):
    """PyTorch-style uniform(+/- 1/sqrt(fan_in)) Linear params.

    Returns flat list [w0, b0, w1, b1, ...]; w stored as [in, out], b as [1, out].
    """
    dims = [input_dim] + [hidden_dim] * (num_hidden + 1) + [output_dim]
    params = []
    for i in range(len(dims) - 1):
        fan_in, fan_out = dims[i], dims[i + 1]
        key, kw, kb = jax.random.split(key, 3)
        bound = 1.0 / jnp.sqrt(jnp.float32(fan_in))
        w = jax.random.uniform(kw, (fan_in, fan_out), jnp.float32, -bound, bound)
        b = jax.random.uniform(kb, (1, fan_out), jnp.float32, -bound, bound)
        params += [w, b]
    return params, key


def pack_double_q_params(q1_params, q2_params, obs_dim, act_dim, hidden_dim,
                         num_hidden, weight_dtype=jnp.float32):
    """Pack both MLPs into per-layer fused slabs (zero-padded, correctness-safe)."""
    H = hidden_dim
    Fh = _round_up(2 * H, 128)
    Fo = _round_up(2 * act_dim, 128)
    obs_pad = _round_up(obs_dim, 8)
    Lh = max(num_hidden, 1)                   # dummy slab if num_hidden == 0

    w0 = jnp.zeros((obs_pad, Fh), weight_dtype)
    b0 = jnp.zeros((1, Fh), jnp.float32)
    wh = jnp.zeros((Lh, Fh, Fh), weight_dtype)
    bh = jnp.zeros((Lh, 1, Fh), jnp.float32)
    wf = jnp.zeros((Fh, Fo), weight_dtype)
    bf = jnp.zeros((1, Fo), jnp.float32)

    # Layer 0: obs -> 2H (q1 cols [0:H], q2 cols [H:2H]).
    w1, bias1 = q1_params[0], q1_params[1]
    w2, bias2 = q2_params[0], q2_params[1]
    w0 = w0.at[:obs_dim, :H].set(w1.astype(weight_dtype))
    w0 = w0.at[:obs_dim, H:2 * H].set(w2.astype(weight_dtype))
    b0 = b0.at[0, :H].set(bias1[0])
    b0 = b0.at[0, H:2 * H].set(bias2[0])

    # Hidden layers: block-diagonal 2H -> 2H.
    for j in range(num_hidden):
        i = j + 1
        w1, bias1 = q1_params[2 * i], q1_params[2 * i + 1]
        w2, bias2 = q2_params[2 * i], q2_params[2 * i + 1]
        wh = wh.at[j, :H, :H].set(w1.astype(weight_dtype))
        wh = wh.at[j, H:2 * H, H:2 * H].set(w2.astype(weight_dtype))
        bh = bh.at[j, 0, :H].set(bias1[0])
        bh = bh.at[j, 0, H:2 * H].set(bias2[0])

    # Final layer: block-diagonal 2H -> 2*act_dim.
    i = num_hidden + 1
    w1, bias1 = q1_params[2 * i], q1_params[2 * i + 1]
    w2, bias2 = q2_params[2 * i], q2_params[2 * i + 1]
    wf = wf.at[:H, :act_dim].set(w1.astype(weight_dtype))
    wf = wf.at[H:2 * H, act_dim:2 * act_dim].set(w2.astype(weight_dtype))
    bf = bf.at[0, :act_dim].set(bias1[0])
    bf = bf.at[0, act_dim:2 * act_dim].set(bias2[0])

    return {"w0": w0, "b0": b0, "wh": wh, "bh": bh, "wf": wf, "bf": bf}


# ----------------------------------------------------------------------------
# Forward
# ----------------------------------------------------------------------------
@functools.partial(
    jax.jit,
    static_argnames=("act_dim", "num_hidden", "activation",
                     "single_buffer_weights", "mxu_bf16"))
def _forward_impl(o, w0, b0, wh, bh, wf, bf, *, act_dim, num_hidden,
                  activation, single_buffer_weights, mxu_bf16):
    batch, obs_dim = o.shape
    obs_pad, Fh = w0.shape
    Lh = wh.shape[0]
    Fo = wf.shape[1]

    # --- batch tiling: fixed large tile + cdiv grid (tail tile masked) -------
    batch_tile = min(512, _round_up(batch, 8))
    num_tiles = pl.cdiv(batch, batch_tile)
    if num_tiles == 1 and batch_tile >= 16:
        # Give the parallel axis >= 2 steps so v7x's 2nd TensorCore gets work.
        batch_tile = _round_up(pl.cdiv(batch, 2), 8)
        num_tiles = pl.cdiv(batch, batch_tile)
    grid = (num_tiles,)

    # --- VMEM budget derived from actual buffer sizes ------------------------
    f32b = 4
    w_item = jnp.dtype(w0.dtype).itemsize
    n_buf_w = 1 if single_buffer_weights else 2
    io_bytes = 2 * batch_tile * obs_dim * f32b + 2 * batch_tile * Fo * f32b
    w_bytes = n_buf_w * (obs_pad * Fh + Lh * Fh * Fh + Fh * Fo) * w_item
    b_bytes = n_buf_w * (Fh + Lh * Fh + Fo) * f32b
    act_bytes = 4 * batch_tile * Fh * f32b        # live f32 intermediates
    vmem_limit = int(min(64 * 1024 * 1024,
                         max(2 * (io_bytes + w_bytes + b_bytes + act_bytes),
                             4 * 1024 * 1024)))

    # --- BlockSpecs -----------------------------------------------------------
    def const_spec(shape):
        idx = lambda i, _n=len(shape): (0,) * _n
        if single_buffer_weights:
            # Constant block index -> no re-DMA; single buffer halves VMEM.
            return pl.BlockSpec(shape, idx, pipeline_mode=pl.Buffered(1))
        return pl.BlockSpec(shape, idx)

    in_specs = [
        pl.BlockSpec((batch_tile, obs_dim), lambda i: (i, 0)),   # observations
        const_spec((obs_pad, Fh)),                               # w0
        const_spec((1, Fh)),                                     # b0
        const_spec((Lh, Fh, Fh)),                                # wh
        const_spec((Lh, 1, Fh)),                                 # bh
        const_spec((Fh, Fo)),                                    # wf
        const_spec((1, Fo)),                                     # bf
    ]
    out_spec = pl.BlockSpec((batch_tile, Fo), lambda i: (i, 0))

    kernel = _make_kernel(num_hidden, activation, obs_dim, obs_pad, mxu_bf16)

    out = pl.pallas_call(
        kernel,
        out_shape=jax.ShapeDtypeStruct((batch, Fo), jnp.float32),
        grid=grid,
        in_specs=in_specs,
        out_specs=out_spec,
        compiler_params=pltpu.CompilerParams(
            dimension_semantics=("parallel",),
            vmem_limit_bytes=vmem_limit,
        ),
    )(o, w0, b0, wh, bh, wf, bf)

    # One contiguous slice, then split (single wrapper-side slice kernel).
    q12 = out[:, :2 * act_dim]
    return q12[:, :act_dim], q12[:, act_dim:]


def double_q_forward(o, packed, *, act_dim, num_hidden, activation="silu",
                     mxu_bf16=False):
    """Returns (q1, q2), each [batch, act_dim]."""
    args = (o, packed["w0"], packed["b0"], packed["wh"], packed["bh"],
            packed["wf"], packed["bf"])
    kw = dict(act_dim=act_dim, num_hidden=num_hidden, activation=activation,
              mxu_bf16=mxu_bf16)
    try:
        return _forward_impl(*args, single_buffer_weights=True, **kw)
    except Exception:
        # Fallback for JAX builds that reject pl.Buffered(1) / pipeline_mode:
        # default double-buffering is functionally identical (just more VMEM).
        return _forward_impl(*args, single_buffer_weights=False, **kw)


# ----------------------------------------------------------------------------
# Pure-JAX reference (unfused DoubleQNetwork forward)
# ----------------------------------------------------------------------------
def reference_forward(o, q1_params, q2_params, num_linears, activation="silu"):
    def mlp(x, params):
        h = x
        for i in range(num_linears):
            h = jnp.dot(h, params[2 * i],
                        precision=jax.lax.Precision.HIGHEST) + params[2 * i + 1]
            if i < num_linears - 1:
                if activation == "silu":
                    h = h * jax.nn.sigmoid(h)
                else:
                    h = jnp.maximum(h, 0.0)
        return h

    return mlp(o, q1_params), mlp(o, q2_params)


if __name__ == "__main__":
    # Small shapes consistent with DoubleQNetwork(obs_dim, act_dim, hidden_dim, num_hidden)
    batch = 8
    obs_dim = 16
    act_dim = 4
    hidden_dim = 32
    num_hidden = 2
    num_linears = num_hidden + 2   # Linear0 + num_hidden hidden Linears + final

    key = jax.random.PRNGKey(0)
    key, k_obs = jax.random.split(key)
    o = jax.random.normal(k_obs, (batch, obs_dim), jnp.float32)

    q1_params, key = init_mlp_params(key, obs_dim, act_dim, hidden_dim, num_hidden)
    q2_params, key = init_mlp_params(key, obs_dim, act_dim, hidden_dim, num_hidden)

    # Pack once (weights are fixed across forward calls in a typical RL loop).
    packed = pack_double_q_params(q1_params, q2_params, obs_dim, act_dim,
                                  hidden_dim, num_hidden)
    packed = jax.tree_util.tree_map(jax.block_until_ready, packed)

    q1, q2 = double_q_forward(o, packed, act_dim=act_dim,
                              num_hidden=num_hidden, activation="silu")
    q1 = jax.block_until_ready(q1)
    q2 = jax.block_until_ready(q2)

    # Sanity check vs pure-JAX reference of the unfused DoubleQNetwork.
    r1, r2 = reference_forward(o, q1_params, q2_params, num_linears, "silu")
    assert q1.shape == (batch, act_dim) and q2.shape == (batch, act_dim)
    assert bool(jnp.all(jnp.isfinite(q1))) and bool(jnp.all(jnp.isfinite(q2)))
    assert jnp.allclose(q1, r1, atol=1e-2, rtol=1e-2)
    assert jnp.allclose(q2, r2, atol=1e-2, rtol=1e-2)

    print("KERNEL_OK")
</pallas_src>

<mosaic_0001>
module attributes {stable_mosaic.version = 11 : i64} {
  func.func @kernel(%arg0: i32, %arg1: memref<8x16xf32, #tpu.memory_space<vmem>>, %arg2: memref<16x128xf32, #tpu.memory_space<vmem>>, %arg3: memref<1x128xf32, #tpu.memory_space<vmem>>, %arg4: memref<2x128x128xf32, #tpu.memory_space<vmem>>, %arg5: memref<2x1x128xf32, #tpu.memory_space<vmem>>, %arg6: memref<128x128xf32, #tpu.memory_space<vmem>>, %arg7: memref<1x128xf32, #tpu.memory_space<vmem>>, %arg8: memref<8x128xf32, #tpu.memory_space<vmem>>) attributes {dimension_semantics = [#tpu.dimension_semantics<parallel>], iteration_bounds = array<i64: 1>, scalar_prefetch = 0 : i64, scratch_operands = 0 : i64, tpu.core_type = #tpu.core_type<tc>, window_params = [{transform_indices = @transform_0, window_bounds = array<i64: 8, 16>}, {pipeline_mode = #tpu.pipeline_mode<synchronous>, transform_indices = @transform_1, window_bounds = array<i64: 16, 128>}, {pipeline_mode = #tpu.pipeline_mode<synchronous>, transform_indices = @transform_2, window_bounds = array<i64: 1, 128>}, {pipeline_mode = #tpu.pipeline_mode<synchronous>, transform_indices = @transform_3, window_bounds = array<i64: 2, 128, 128>}, {pipeline_mode = #tpu.pipeline_mode<synchronous>, transform_indices = @transform_4, window_bounds = array<i64: 2, 1, 128>}, {pipeline_mode = #tpu.pipeline_mode<synchronous>, transform_indices = @transform_5, window_bounds = array<i64: 128, 128>}, {pipeline_mode = #tpu.pipeline_mode<synchronous>, transform_indices = @transform_6, window_bounds = array<i64: 1, 128>}, {transform_indices = @transform_7, window_bounds = array<i64: 8, 128>}]} {
    %c0 = arith.constant 0 : index
    %c0_0 = arith.constant 0 : index
    %0 = vector.load %arg1[%c0, %c0_0] : memref<8x16xf32, #tpu.memory_space<vmem>>, vector<8x16xf32>
    %c0_1 = arith.constant 0 : index
    %c0_2 = arith.constant 0 : index
    %1 = vector.load %arg2[%c0_1, %c0_2] : memref<16x128xf32, #tpu.memory_space<vmem>>, vector<16x128xf32>
    %cst = arith.constant dense<0.000000e+00> : vector<8x128xf32>
    %2 = tpu.matmul %0, %1, %cst {dimension_numbers = #tpu.dot_dimension_numbers<[1], [0], [0], [1], [0, 0, 1, 1], [], []>} : vector<8x16xf32>, vector<16x128xf32>, vector<8x128xf32> -> vector<8x128xf32>
    %c0_3 = arith.constant 0 : index
    %c0_4 = arith.constant 0 : index
    %3 = vector.load %arg3[%c0_3, %c0_4] : memref<1x128xf32, #tpu.memory_space<vmem>>, vector<1x128xf32>
    %4 = vector.broadcast %3 : vector<1x128xf32> to vector<8x128xf32>
    %5 = arith.addf %2, %4 : vector<8x128xf32>
    %6 = arith.negf %5 : vector<8x128xf32>
    %7 = math.exp %6 : vector<8x128xf32>
    %cst_5 = arith.constant 1.000000e+00 : f32
    %8 = vector.broadcast %cst_5 : f32 to vector<8x128xf32>
    %9 = arith.addf %8, %7 : vector<8x128xf32>
    %10 = arith.divf %8, %9 : vector<8x128xf32>
    %11 = arith.mulf %5, %10 : vector<8x128xf32>
    %c0_6 = arith.constant 0 : index
    %c0_7 = arith.constant 0 : index
    %c0_8 = arith.constant 0 : index
    %12 = vector.load %arg4[%c0_6, %c0_7, %c0_8] : memref<2x128x128xf32, #tpu.memory_space<vmem>>, vector<1x128x128xf32>
    %13 = vector.shape_cast %12 : vector<1x128x128xf32> to vector<128x128xf32>
    %cst_9 = arith.constant dense<0.000000e+00> : vector<8x128xf32>
    %14 = tpu.matmul %11, %13, %cst_9 {dimension_numbers = #tpu.dot_dimension_numbers<[1], [0], [0], [1], [0, 0, 1, 1], [], []>} : vector<8x128xf32>, vector<128x128xf32>, vector<8x128xf32> -> vector<8x128xf32>
    %c0_10 = arith.constant 0 : index
    %c0_11 = arith.constant 0 : index
    %c0_12 = arith.constant 0 : index
    %15 = vector.load %arg5[%c0_10, %c0_11, %c0_12] : memref<2x1x128xf32, #tpu.memory_space<vmem>>, vector<1x1x128xf32>
    %16 = vector.shape_cast %15 : vector<1x1x128xf32> to vector<1x128xf32>
    %17 = vector.broadcast %16 : vector<1x128xf32> to vector<8x128xf32>
    %18 = arith.addf %14, %17 : vector<8x128xf32>
    %19 = arith.negf %18 : vector<8x128xf32>
    %20 = math.exp %19 : vector<8x128xf32>
    %cst_13 = arith.constant 1.000000e+00 : f32
    %21 = vector.broadcast %cst_13 : f32 to vector<8x128xf32>
    %22 = arith.addf %21, %20 : vector<8x128xf32>
    %23 = arith.divf %21, %22 : vector<8x128xf32>
    %24 = arith.mulf %18, %23 : vector<8x128xf32>
    %c1 = arith.constant 1 : index
    %c0_14 = arith.constant 0 : index
    %c0_15 = arith.constant 0 : index
    %25 = vector.load %arg4[%c1, %c0_14, %c0_15] : memref<2x128x128xf32, #tpu.memory_space<vmem>>, vector<1x128x128xf32>
    %26 = vector.shape_cast %25 : vector<1x128x128xf32> to vector<128x128xf32>
    %cst_16 = arith.constant dense<0.000000e+00> : vector<8x128xf32>
    %27 = tpu.matmul %24, %26, %cst_16 {dimension_numbers = #tpu.dot_dimension_numbers<[1], [0], [0], [1], [0, 0, 1, 1], [], []>} : vector<8x128xf32>, vector<128x128xf32>, vector<8x128xf32> -> vector<8x128xf32>
    %c1_17 = arith.constant 1 : index
    %c0_18 = arith.constant 0 : index
    %c0_19 = arith.constant 0 : index
    %28 = vector.load %arg5[%c1_17, %c0_18, %c0_19] : memref<2x1x128xf32, #tpu.memory_space<vmem>>, vector<1x1x128xf32>
    %29 = vector.shape_cast %28 : vector<1x1x128xf32> to vector<1x128xf32>
    %30 = vector.broadcast %29 : vector<1x128xf32> to vector<8x128xf32>
    %31 = arith.addf %27, %30 : vector<8x128xf32>
    %32 = arith.negf %31 : vector<8x128xf32>
    %33 = math.exp %32 : vector<8x128xf32>
    %cst_20 = arith.constant 1.000000e+00 : f32
    %34 = vector.broadcast %cst_20 : f32 to vector<8x128xf32>
    %35 = arith.addf %34, %33 : vector<8x128xf32>
    %36 = arith.divf %34, %35 : vector<8x128xf32>
    %37 = arith.mulf %31, %36 : vector<8x128xf32>
    %c0_21 = arith.constant 0 : index
    %c0_22 = arith.constant 0 : index
    %38 = vector.load %arg6[%c0_21, %c0_22] : memref<128x128xf32, #tpu.memory_space<vmem>>, vector<128x128xf32>
    %cst_23 = arith.constant dense<0.000000e+00> : vector<8x128xf32>
    %39 = tpu.matmul %37, %38, %cst_23 {dimension_numbers = #tpu.dot_dimension_numbers<[1], [0], [0], [1], [0, 0, 1, 1], [], []>} : vector<8x128xf32>, vector<128x128xf32>, vector<8x128xf32> -> vector<8x128xf32>
    %c0_24 = arith.constant 0 : index
    %c0_25 = arith.constant 0 : index
    %40 = vector.load %arg7[%c0_24, %c0_25] : memref<1x128xf32, #tpu.memory_space<vmem>>, vector<1x128xf32>
    %41 = vector.broadcast %40 : vector<1x128xf32> to vector<8x128xf32>
    %42 = arith.addf %39, %41 : vector<8x128xf32>
    %c0_26 = arith.constant 0 : index
    %c0_27 = arith.constant 0 : index
    %43 = vector.load %arg8[%c0_26, %c0_27] : memref<8x128xf32, #tpu.memory_space<vmem>>, vector<8x128xf32>
    tpu.vector_store %arg8[%c0_26, %c0_27], %42 {strides = array<i32>} : memref<8x128xf32, #tpu.memory_space<vmem>>, vector<8x128xf32>,
    return
  }
  func.func @transform_0(%arg0: i32) -> (i32, i32) {
    %c0_i32 = arith.constant 0 : i32
    %c0_i32_0 = arith.constant 0 : i32
    return %arg0, %c0_i32 : i32, i32
  }
  func.func @transform_1(%arg0: i32) -> (i32, i32) {
    %c0_i32 = arith.constant 0 : i32
    %c0_i32_0 = arith.constant 0 : i32
    %c0_i32_1 = arith.constant 0 : i32
    return %c0_i32, %c0_i32_0 : i32, i32
  }
  func.func @transform_2(%arg0: i32) -> (i32, i32) {
    %c0_i32 = arith.constant 0 : i32
    %c0_i32_0 = arith.constant 0 : i32
    %c0_i32_1 = arith.constant 0 : i32
    return %c0_i32, %c0_i32_0 : i32, i32
  }
  func.func @transform_3(%arg0: i32) -> (i32, i32, i32) {
    %c0_i32 = arith.constant 0 : i32
    %c0_i32_0 = arith.constant 0 : i32
    %c0_i32_1 = arith.constant 0 : i32
    %c0_i32_2 = arith.constant 0 : i32
    return %c0_i32, %c0_i32_0, %c0_i32_1 : i32, i32, i32
  }
  func.func @transform_4(%arg0: i32) -> (i32, i32, i32) {
    %c0_i32 = arith.constant 0 : i32
    %c0_i32_0 = arith.constant 0 : i32
    %c0_i32_1 = arith.constant 0 : i32
    %c0_i32_2 = arith.constant 0 : i32
    return %c0_i32, %c0_i32_0, %c0_i32_1 : i32, i32, i32
  }
  func.func @transform_5(%arg0: i32) -> (i32, i32) {
    %c0_i32 = arith.constant 0 : i32
    %c0_i32_0 = arith.constant 0 : i32
    %c0_i32_1 = arith.constant 0 : i32
    return %c0_i32, %c0_i32_0 : i32, i32
  }
  func.func @transform_6(%arg0: i32) -> (i32, i32) {
    %c0_i32 = arith.constant 0 : i32
    %c0_i32_0 = arith.constant 0 : i32
    %c0_i32_1 = arith.constant 0 : i32
    return %c0_i32, %c0_i32_0 : i32, i32
  }
  func.func @transform_7(%arg0: i32) -> (i32, i32) {
    %c0_i32 = arith.constant 0 : i32
    %c0_i32_0 = arith.constant 0 : i32
    return %arg0, %c0_i32 : i32, i32
  }
}

module attributes {stable_mosaic.version = 11 : i64} {
  func.func @kernel(%arg0: i32, %arg1: memref<8x16xf32, #tpu.memory_space<vmem>>, %arg2: memref<16x128xf32, #tpu.memory_space<vmem>>, %arg3: memref<1x128xf32, #tpu.memory_space<vmem>>, %arg4: memref<2x128x128xf32, #tpu.memory_space<vmem>>, %arg5: memref<2x1x128xf32, #tpu.memory_space<vmem>>, %arg6: memref<128x128xf32, #tpu.memory_space<vmem>>, %arg7: memref<1x128xf32, #tpu.memory_space<vmem>>, %arg8: memref<8x128xf32, #tpu.memory_space<vmem>>) attributes {dimension_semantics = [#tpu.dimension_semantics<parallel>], iteration_bounds = array<i64: 1>, scalar_prefetch = 0 : i64, scratch_operands = 0 : i64, tpu.core_type = #tpu.core_type<tc>, window_params = [{transform_indices = @transform_0, window_bounds = array<i64: 8, 16>}, {pipeline_mode = #tpu.pipeline_mode<synchronous>, transform_indices = @transform_1, window_bounds = array<i64: 16, 128>}, {pipeline_mode = #tpu.pipeline_mode<synchronous>, transform_indices = @transform_2, window_bounds = array<i64: 1, 128>}, {pipeline_mode = #tpu.pipeline_mode<synchronous>, transform_indices = @transform_3, window_bounds = array<i64: 2, 128, 128>}, {pipeline_mode = #tpu.pipeline_mode<synchronous>, transform_indices = @transform_4, window_bounds = array<i64: 2, 1, 128>}, {pipeline_mode = #tpu.pipeline_mode<synchronous>, transform_indices = @transform_5, window_bounds = array<i64: 128, 128>}, {pipeline_mode = #tpu.pipeline_mode<synchronous>, transform_indices = @transform_6, window_bounds = array<i64: 1, 128>}, {transform_indices = @transform_7, window_bounds = array<i64: 8, 128>}]} {
    %c0 = arith.constant 0 : index
    %c0_0 = arith.constant 0 : index
    %0 = vector.load %arg1[%c0, %c0_0] : memref<8x16xf32, #tpu.memory_space<vmem>>, vector<8x16xf32>
    %c0_1 = arith.constant 0 : index
    %c0_2 = arith.constant 0 : index
    %1 = vector.load %arg2[%c0_1, %c0_2] : memref<16x128xf32, #tpu.memory_space<vmem>>, vector<16x128xf32>
    %cst = arith.constant dense<0.000000e+00> : vector<8x128xf32>
    %2 = tpu.matmul %0, %1, %cst {dimension_numbers = #tpu.dot_dimension_numbers<[1], [0], [0], [1], [0, 0, 1, 1], [], []>} : vector<8x16xf32>, vector<16x128xf32>, vector<8x128xf32> -> vector<8x128xf32>
    %c0_3 = arith.constant 0 : index
    %c0_4 = arith.constant 0 : index
    %3 = vector.load %arg3[%c0_3, %c0_4] : memref<1x128xf32, #tpu.memory_space<vmem>>, vector<1x128xf32>
    %4 = vector.broadcast %3 : vector<1x128xf32> to vector<8x128xf32>
    %5 = arith.addf %2, %4 : vector<8x128xf32>
    %6 = arith.negf %5 : vector<8x128xf32>
    %7 = math.exp %6 : vector<8x128xf32>
    %cst_5 = arith.constant 1.000000e+00 : f32
    %8 = vector.broadcast %cst_5 : f32 to vector<8x128xf32>
    %9 = arith.addf %8, %7 : vector<8x128xf32>
    %10 = arith.divf %8, %9 : vector<8x128xf32>
    %11 = arith.mulf %5, %10 : vector<8x128xf32>
    %c0_6 = arith.constant 0 : index
    %c0_7 = arith.constant 0 : index
    %c0_8 = arith.constant 0 : index
    %12 = vector.load %arg4[%c0_6, %c0_7, %c0_8] : memref<2x128x128xf32, #tpu.memory_space<vmem>>, vector<1x128x128xf32>
    %13 = vector.shape_cast %12 : vector<1x128x128xf32> to vector<128x128xf32>
    %cst_9 = arith.constant dense<0.000000e+00> : vector<8x128xf32>
    %14 = tpu.matmul %11, %13, %cst_9 {dimension_numbers = #tpu.dot_dimension_numbers<[1], [0], [0], [1], [0, 0, 1, 1], [], []>} : vector<8x128xf32>, vector<128x128xf32>, vector<8x128xf32> -> vector<8x128xf32>
    %c0_10 = arith.constant 0 : index
    %c0_11 = arith.constant 0 : index
    %c0_12 = arith.constant 0 : index
    %15 = vector.load %arg5[%c0_10, %c0_11, %c0_12] : memref<2x1x128xf32, #tpu.memory_space<vmem>>, vector<1x1x128xf32>
    %16 = vector.shape_cast %15 : vector<1x1x128xf32> to vector<1x128xf32>
    %17 = vector.broadcast %16 : vector<1x128xf32> to vector<8x128xf32>
    %18 = arith.addf %14, %17 : vector<8x128xf32>
    %19 = arith.negf %18 : vector<8x128xf32>
    %20 = math.exp %19 : vector<8x128xf32>
    %cst_13 = arith.constant 1.000000e+00 : f32
    %21 = vector.broadcast %cst_13 : f32 to vector<8x128xf32>
    %22 = arith.addf %21, %20 : vector<8x128xf32>
    %23 = arith.divf %21, %22 : vector<8x128xf32>
    %24 = arith.mulf %18, %23 : vector<8x128xf32>
    %c1 = arith.constant 1 : index
    %c0_14 = arith.constant 0 : index
    %c0_15 = arith.constant 0 : index
    %25 = vector.load %arg4[%c1, %c0_14, %c0_15] : memref<2x128x128xf32, #tpu.memory_space<vmem>>, vector<1x128x128xf32>
    %26 = vector.shape_cast %25 : vector<1x128x128xf32> to vector<128x128xf32>
    %cst_16 = arith.constant dense<0.000000e+00> : vector<8x128xf32>
    %27 = tpu.matmul %24, %26, %cst_16 {dimension_numbers = #tpu.dot_dimension_numbers<[1], [0], [0], [1], [0, 0, 1, 1], [], []>} : vector<8x128xf32>, vector<128x128xf32>, vector<8x128xf32> -> vector<8x128xf32>
    %c1_17 = arith.constant 1 : index
    %c0_18 = arith.constant 0 : index
    %c0_19 = arith.constant 0 : index
    %28 = vector.load %arg5[%c1_17, %c0_18, %c0_19] : memref<2x1x128xf32, #tpu.memory_space<vmem>>, vector<1x1x128xf32>
    %29 = vector.shape_cast %28 : vector<1x1x128xf32> to vector<1x128xf32>
    %30 = vector.broadcast %29 : vector<1x128xf32> to vector<8x128xf32>
    %31 = arith.addf %27, %30 : vector<8x128xf32>
    %32 = arith.negf %31 : vector<8x128xf32>
    %33 = math.exp %32 : vector<8x128xf32>
    %cst_20 = arith.constant 1.000000e+00 : f32
    %34 = vector.broadcast %cst_20 : f32 to vector<8x128xf32>
    %35 = arith.addf %34, %33 : vector<8x128xf32>
    %36 = arith.divf %34, %35 : vector<8x128xf32>
    %37 = arith.mulf %31, %36 : vector<8x128xf32>
    %c0_21 = arith.constant 0 : index
    %c0_22 = arith.constant 0 : index
    %38 = vector.load %arg6[%c0_21, %c0_22] : memref<128x128xf32, #tpu.memory_space<vmem>>, vector<128x128xf32>
    %cst_23 = arith.constant dense<0.000000e+00> : vector<8x128xf32>
    %39 = tpu.matmul %37, %38, %cst_23 {dimension_numbers = #tpu.dot_dimension_numbers<[1], [0], [0], [1], [0, 0, 1, 1], [], []>} : vector<8x128xf32>, vector<128x128xf32>, vector<8x128xf32> -> vector<8x128xf32>
    %c0_24 = arith.constant 0 : index
    %c0_25 = arith.constant 0 : index
    %40 = vector.load %arg7[%c0_24, %c0_25] : memref<1x128xf32, #tpu.memory_space<vmem>>, vector<1x128xf32>
    %41 = vector.broadcast %40 : vector<1x128xf32> to vector<8x128xf32>
    %42 = arith.addf %39, %41 : vector<8x128xf32>
    %c0_26 = arith.constant 0 : index
    %c0_27 = arith.constant 0 : index
    %43 = vector.load %arg8[%c0_26, %c0_27] : memref<8x128xf32, #tpu.memory_space<vmem>>, vector<8x128xf32>
    tpu.vector_store %arg8[%c0_26, %c0_27], %42 {strides = array<i32>} : memref<8x128xf32, #tpu.memory_space<vmem>>, vector<8x128xf32>,
    return
  }
  func.func @transform_0(%arg0: i32) -> (i32, i32) {
    %c0_i32 = arith.constant 0 : i32
    %c0_i32_0 = arith.constant 0 : i32
    return %arg0, %c0_i32 : i32, i32
  }
  func.func @transform_1(%arg0: i32) -> (i32, i32) {
    %c0_i32 = arith.constant 0 : i32
    %c0_i32_0 = arith.constant 0 : i32
    %c0_i32_1 = arith.constant 0 : i32
    return %c0_i32, %c0_i32_0 : i32, i32
  }
  func.func @transform_2(%arg0: i32) -> (i32, i32) {
    %c0_i32 = arith.constant 0 : i32
    %c0_i32_0 = arith.constant 0 : i32
    %c0_i32_1 = arith.constant 0 : i32
    return %c0_i32, %c0_i32_0 : i32, i32
  }
  func.func @transform_3(%arg0: i32) -> (i32, i32, i32) {
    %c0_i32 = arith.constant 0 : i32
    %c0_i32_0 = arith.constant 0 : i32
    %c0_i32_1 = arith.constant 0 : i32
    %c0_i32_2 = arith.constant 0 : i32
    return %c0_i32, %c0_i32_0, %c0_i32_1 : i32, i32, i32
  }
  func.func @transform_4(%arg0: i32) -> (i32, i32, i32) {
    %c0_i32 = arith.constant 0 : i32
    %c0_i32_0 = arith.constant 0 : i32
    %c0_i32_1 = arith.constant 0 : i32
    %c0_i32_2 = arith.constant 0 : i32
    return %c0_i32, %c0_i32_0, %c0_i32_1 : i32, i32, i32
  }
  func.func @transform_5(%arg0: i32) -> (i32, i32) {
    %c0_i32 = arith.constant 0 : i32
    %c0_i32_0 = arith.constant 0 : i32
    %c0_i32_1 = arith.constant 0 : i32
    return %c0_i32, %c0_i32_0 : i32, i32
  }
  func.func @transform_6(%arg0: i32) -> (i32, i32) {
    %c0_i32 = arith.constant 0 : i32
    %c0_i32_0 = arith.constant 0 : i32
    %c0_i32_1 = arith.constant 0 : i32
    return %c0_i32, %c0_i32_0 : i32, i32
  }
  func.func @transform_7(%arg0: i32) -> (i32, i32) {
    %c0_i32 = arith.constant 0 : i32
    %c0_i32_0 = arith.constant 0 : i32
    return %arg0, %c0_i32 : i32, i32
  }
}

</mosaic_0001>

<bundles_post_ra>
// kernel: _forward_impl.1
= control target key start
LH: loop header
LB: loop body
LE: loop exit
PB: predicated region body
PF: predicated region fallthrough
CT: control target
= control target key end

     0   :  { %12 = vsyncpa [#allocation3], 0  ;;  %s992_s0 = inlined_call_operand.hbm [shape: f32[8,16], index: 0, kind: input, shape index: {}]   ;;  %s993_s1 = inlined_call_operand.hbm [shape: f32[16,128], index: 1, kind: input, shape index: {}]   ;;  %s994_s2 = inlined_call_operand.vmem [shape: f32[1,128], index: 2, kind: input, shape index: {}]   ;;  %s995_s3 = inlined_call_operand.hbm [shape: f32[2,128,128], index: 3, kind: input, shape index: {}]   ;;  %s996_s4 = inlined_call_operand.vmem [shape: f32[2,1,128], index: 4, kind: input, shape index: {}]   ;;  %s997_s5 = inlined_call_operand.hbm [shape: f32[128,128], index: 5, kind: input, shape index: {}]   ;;  %s998_s6 = inlined_call_operand.vmem [shape: f32[1,128], index: 6, kind: input, shape index: {}]   ;;  %s999_s7 = inlined_call_operand.vmem [shape: f32[8,128], index: 7, kind: output, shape index: {}]  }
   0x1   :  { %13 = vsyncpa [#allocation5], 0 }
   0x2   :  { %14 = vsyncpa [#allocation8], 0  ;;  %s838_s24 = smov [#allocation4]   ;;  %s744_s28 = scalar_lea.hbm %s993_s1, 256 }
   0x3   :  { %s30_s25 = sshll.u32 %s838_s24, 4  ;;  %p745_p0 = scmp.ne.s32.totalorder %s993_s1, %s744_s28  ;;  %s31_s25 = int_to_ptr.vmem [resolvable:$true] %s30_s25 }
   0x4   :  { %p748_p1 = scmp.lt.u32.totalorder %s744_s28, %s993_s1 }
   0x6   :  { %p750_p2 = pnand %p748_p1, %p745_p0 }
   0x8   :  { %753 = shalt.err (!%p750_p2)
}
   0x9   :  { %s754_s10 = scalar_lea.vmem %s31_s25, 256  ;;  %p759_p4 = scmp.lt.s32.totalorder %s31_s25, %s31_s25 }
   0xa   :  { %p755_p3 = scmp.ne.s32.totalorder %s31_s25, %s754_s10  ;;  %p760_p5 = scmp.lt.s32.totalorder %s754_s10, %s754_s10 }
   0xc   :  { %p761_p6 = por %p760_p5, %p759_p4 }
   0xe   :  { %p762_p7 = pnand %p761_p6, %p755_p3 }
  0x10   :  { %765 = shalt.err (!%p762_p7)
}
  0x11   :  { %s839_s11 = smov 128   ;;  %s840_s12 = smov 8  }
  0x12   :  { %36 = dma.hbm_to_vmem [thread:$0]  %s993_s1, 256, %s31_s25, [#allocation5], %s839_s11, %s839_s11, %s840_s12  }
  0x13   :  { %s841_s15 = smov [#allocation2]   ;;  %s842_s17 = smov [#allocation6]  }
  0x14   :  { %s21_s16 = sshll.u32 %s841_s15, 4  ;;  %s44_s18 = sshll.u32 %s842_s17, 4  ;;  %s22_s16 = int_to_ptr.vmem [resolvable:$true] %s21_s16  ;;  %s45_s18 = int_to_ptr.vmem [resolvable:$true] %s44_s18 }
  0x15   :  { %s766_s21 = scalar_lea.hbm %s992_s0, 128 }
  0x16   :  { %p767_p8 = scmp.ne.s32.totalorder %s992_s0, %s766_s21  ;;  %p770_p9 = scmp.lt.u32.totalorder %s766_s21, %s992_s0 }
  0x18   :  { %p772_p10 = pnand %p770_p9, %p767_p8 }
  0x1a   :  { %775 = shalt.err (!%p772_p10)
}
  0x1b   :  { %s776_s1 = scalar_lea.vmem %s22_s16, 128  ;;  %p781_p12 = scmp.lt.s32.totalorder %s22_s16, %s22_s16 }
  0x1c   :  { %p777_p11 = scmp.ne.s32.totalorder %s22_s16, %s776_s1  ;;  %p782_p13 = scmp.lt.s32.totalorder %s776_s1, %s776_s1 }
  0x1e   :  { %p783_p0 = por %p782_p13, %p781_p12 }
  0x20   :  { %p784_p1 = pnand %p783_p0, %p777_p11 }
  0x22   :  { %787 = shalt.err (!%p784_p1)
}
  0x23   :  { %24 = dma.hbm_to_vmem [thread:$0]  %s992_s0, 128, %s22_s16, [#allocation3]  }
  0x24   :  { %s788_s30 = scalar_lea.hbm %s995_s3, 4096 }
  0x25   :  { %p789_p2 = scmp.ne.s32.totalorder %s995_s3, %s788_s30  ;;  %p792_p3 = scmp.lt.u32.totalorder %s788_s30, %s995_s3 }
  0x27   :  { %p794_p4 = pnand %p792_p3, %p789_p2 }
  0x29   :  { %797 = shalt.err (!%p794_p4)
}
  0x2a   :  { %s798_s14 = scalar_lea.vmem %s45_s18, 4096  ;;  %p803_p6 = scmp.lt.s32.totalorder %s45_s18, %s45_s18 }
  0x2b   :  { %p799_p5 = scmp.ne.s32.totalorder %s45_s18, %s798_s14  ;;  %p804_p7 = scmp.lt.s32.totalorder %s798_s14, %s798_s14 }
  0x2d   :  { %p805_p8 = por %p804_p7, %p803_p6 }
  0x2f   :  { %p806_p9 = pnand %p805_p8, %p799_p5 }
  0x31   :  { %809 = shalt.err (!%p806_p9)
}
  0x32   :  { %50 = dma.hbm_to_vmem [thread:$0]  %s995_s3, 4096, %s45_s18, [#allocation5], %s839_s11, %s839_s11, %s840_s12  }
  0x33   :  { %s843_s16 = smov [#allocation7]   ;;  %s810_s21 = scalar_lea.hbm %s997_s5, 2048 }
  0x34   :  { %s58_s17 = sshll.u32 %s843_s16, 4  ;;  %p811_p10 = scmp.ne.s32.totalorder %s997_s5, %s810_s21  ;;  %s59_s17 = int_to_ptr.vmem [resolvable:$true] %s58_s17 }
  0x35   :  { %p814_p11 = scmp.lt.u32.totalorder %s810_s21, %s997_s5 }
  0x37   :  { %p816_p12 = pnand %p814_p11, %p811_p10 }
  0x39   :  { %819 = shalt.err (!%p816_p12)
}
  0x3a   :  { %s820_s1 = scalar_lea.vmem %s59_s17, 2048  ;;  %p825_p0 = scmp.lt.s32.totalorder %s59_s17, %s59_s17 }
  0x3b   :  { %p821_p13 = scmp.ne.s32.totalorder %s59_s17, %s820_s1  ;;  %p826_p1 = scmp.lt.s32.totalorder %s820_s1, %s820_s1 }
  0x3d   :  { %p827_p2 = por %p826_p1, %p825_p0 }
  0x3f   :  { %p828_p3 = pnand %p827_p2, %p821_p13 }
  0x41   :  { %831 = shalt.err (!%p828_p3)
}
  0x42   :  { %64 = dma.hbm_to_vmem [thread:$0]  %s997_s5, 2048, %s59_s17, [#allocation8], %s839_s11, %s839_s11, %s840_s12  }
  0x43   :  { %832 = dma.done.wait [#allocation3], 128  }
  0x44   :  { %833 = vsyncadd [#allocation3], 4294967168 }
  0x45   :  { %834 = dma.done.wait [#allocation5], 4352  }
  0x46   :  { %835 = vsyncadd [#allocation5], 4294962944 }
  0x47   :  { %836 = dma.done.wait [#allocation8], 2048  }
  0x48   :  { %837 = vsyncadd [#allocation8], 4294965248  ;;  %v844_v0 = vmov 0.0|0.0   ;;  %vm845_vm0 = vmmov 0   ;;  %v846_v1 = vmov 0.0   ;;  %v80_v2 = vld [vmem:[#allocation4] sm:$0xff] }
  0x49   :  { %648 = vmatprep.subr.bf16.mxu0 %v844_v0  ;;  %540 = vmatprep.mubr.msk.f32.mxu0 %vm845_vm0, %v846_v1  ;;  %v81_v3 = vld [vmem:[#allocation4 + $0x8] sm:$0xff]  ;;  %v79_v5 = vld [vmem:[#allocation2] sm:$0xff]  ;;  %vm89_vm1 = vcmask 130048   ;;  %v170_v6 = vld [vmem:[#allocation6] sm:$0xff] }
  0x4a   :  { %651 = vmatprep.subr.bf16.mxu1 %v844_v0  ;;  %575 = vmatprep.mubr.msk.f32.mxu1 %vm845_vm0, %v846_v1  ;;  %v649_v4 = vpack.c.bf16 %v81_v3, %v80_v2  ;;  %v171_v7 = vld [vmem:[#allocation6 + $0x8] sm:$0xff]  ;;  %v172_v9 = vld [vmem:[#allocation6 + $0x10] sm:$0xff]  ;;  %v173_v10 = vld [vmem:[#allocation6 + $0x18] sm:$0xff] }
  0x4b   :  { %v652_v8 = vpack.c.bf16 %v171_v7, %v170_v6  ;;  %v655_v11 = vpack.c.bf16 %v173_v10, %v172_v9  ;;  %v174_v12 = vld [vmem:[#allocation6 + $0x20] sm:$0xff]  ;;  %v175_v13 = vld [vmem:[#allocation6 + $0x28] sm:$0xff]  ;;  %v176_v15 = vld [vmem:[#allocation6 + $0x30] sm:$0xff] }
  0x4c   :  { %650 = vmatpush3.bf16.msra.mxu0 %v649_v4  ;;  %v658_v14 = vpack.c.bf16 %v175_v13, %v174_v12  ;;  %v177_v16 = vld [vmem:[#allocation6 + $0x38] sm:$0xff]  ;;  %v178_v18 = vld [vmem:[#allocation6 + $0x40] sm:$0xff]  ;;  %v179_v19 = vld [vmem:[#allocation6 + $0x48] sm:$0xff] }
  0x4d   :  { %675 = vmatprep.subr.bf16.mxu0 %v844_v0  ;;  %653 = vmatpush3.bf16.msra.mxu1 %v652_v8  ;;  %v661_v17 = vpack.c.bf16 %v177_v16, %v176_v15  ;;  %v664_v20 = vpack.c.bf16 %v179_v19, %v178_v18  ;;  %v180_v21 = vld [vmem:[#allocation6 + $0x50] sm:$0xff]  ;;  %v181_v22 = vld [vmem:[#allocation6 + $0x58] sm:$0xff]  ;;  %v182_v24 = vld [vmem:[#allocation6 + $0x60] sm:$0xff] }
  0x4e   :  { %654 = vmatprep.subr.bf16.mxu1 %v844_v0  ;;  %v667_v23 = vpack.c.bf16 %v181_v22, %v180_v21  ;;  %v183_v25 = vld [vmem:[#allocation6 + $0x68] sm:$0xff]  ;;  %v184_v27 = vld [vmem:[#allocation6 + $0x70] sm:$0xff]  ;;  %v185_v28 = vld [vmem:[#allocation6 + $0x78] sm:$0xff] }
  0x4f   :  { %541 = vmatmul.mubr.msk.f32.vlgmr.msra.gmra.mrb[0].mxu0 %vm89_vm1, %v79_v5  ;;  %v670_v26 = vpack.c.bf16 %v183_v25, %v182_v24  ;;  %v673_v29 = vpack.c.bf16 %v185_v28, %v184_v27  ;;  %v473_v30 = vld [vmem:[%s994_s2] ss:$0 sm:$0xff]  ;;  %v271_v39 = vld [vmem:[#allocation6 + $0x80] sm:$0xff]  ;;  %v273_v42 = vld [vmem:[#allocation6 + $0x90] sm:$0xff] }
  0x50   :  { %610 = vmatprep.mubr.msk.f32.mxu0 %vm845_vm0, %v846_v1  ;;  %v272_v40 = vld [vmem:[#allocation6 + $0x88] sm:$0xff]  ;;  %v274_v43 = vld [vmem:[#allocation6 + $0x98] sm:$0xff]  ;;  %v275_v45 = vld [vmem:[#allocation6 + $0xa0] sm:$0xff] }
  0x51   :  { %656 = vmatpush3.bf16.msra.mxu1 %v655_v11  ;;  %v676_v41 = vpack.c.bf16 %v272_v40, %v271_v39  ;;  %v679_v44 = vpack.c.bf16 %v274_v43, %v273_v42  ;;  %v276_v46 = vld [vmem:[#allocation6 + $0xa8] sm:$0xff]  ;;  %v277_v48 = vld [vmem:[#allocation6 + $0xb0] sm:$0xff]  ;;  %v278_v49 = vld [vmem:[#allocation6 + $0xb8] sm:$0xff] }
  0x52   :  { %657 = vmatprep.subr.bf16.mxu1 %v844_v0  ;;  %v682_v47 = vpack.c.bf16 %v276_v46, %v275_v45  ;;  %v685_v50 = vpack.c.bf16 %v278_v49, %v277_v48  ;;  %v279_v51 = vld [vmem:[#allocation6 + $0xc0] sm:$0xff]  ;;  %v280_v52 = vld [vmem:[#allocation6 + $0xc8] sm:$0xff]  ;;  %v281_v54 = vld [vmem:[#allocation6 + $0xd0] sm:$0xff] }
  0x53   :  { %677 = vmatpush3.bf16.msra.mxu0 %v676_v41  ;;  %v688_v53 = vpack.c.bf16 %v280_v52, %v279_v51  ;;  %v282_v55 = vld [vmem:[#allocation6 + $0xd8] sm:$0xff]  ;;  %v283_v57 = vld [vmem:[#allocation6 + $0xe0] sm:$0xff]  ;;  %v284_v58 = vld [vmem:[#allocation6 + $0xe8] sm:$0xff] }
  0x54   :  { %678 = vmatprep.subr.bf16.mxu0 %v844_v0  ;;  %v691_v56 = vpack.c.bf16 %v282_v55, %v281_v54  ;;  %v694_v59 = vpack.c.bf16 %v284_v58, %v283_v57  ;;  %v285_v60 = vld [vmem:[#allocation6 + $0xf0] sm:$0xff]  ;;  %v286_v61 = vld [vmem:[#allocation6 + $0xf8] sm:$0xff]  ;;  %v476_v63 = vld [vmem:[%s996_s4] ss:$0 sm:$0xff] }
  0x55   :  { %659 = vmatpush3.bf16.msra.mxu1 %v658_v14  ;;  %v697_v62 = vpack.c.bf16 %v286_v61, %v285_v60  ;;  %v372_v9 = vld [vmem:[#allocation7] sm:$0xff]  ;;  %v373_v10 = vld [vmem:[#allocation7 + $0x8] sm:$0xff]  ;;  %v374_v12 = vld [vmem:[#allocation7 + $0x10] sm:$0xff] }
  0x56   :  { %660 = vmatprep.subr.bf16.mxu1 %v844_v0  ;;  %v700_v11 = vpack.c.bf16 %v373_v10, %v372_v9  ;;  %v375_v13 = vld [vmem:[#allocation7 + $0x18] sm:$0xff]  ;;  %v376_v15 = vld [vmem:[#allocation7 + $0x20] sm:$0xff]  ;;  %v377_v16 = vld [vmem:[#allocation7 + $0x28] sm:$0xff] }
  0x57   :  { %680 = vmatpush3.bf16.msra.mxu0 %v679_v44  ;;  %v703_v14 = vpack.c.bf16 %v375_v13, %v374_v12  ;;  %v378_v18 = vld [vmem:[#allocation7 + $0x30] sm:$0xff]  ;;  %v379_v19 = vld [vmem:[#allocation7 + $0x38] sm:$0xff]  ;;  %v380_v21 = vld [vmem:[#allocation7 + $0x40] sm:$0xff] }
  0x58   :  { %681 = vmatprep.subr.bf16.mxu0 %v844_v0  ;;  %v381_v22 = vld [vmem:[#allocation7 + $0x48] sm:$0xff]  ;;  %v382_v24 = vld [vmem:[#allocation7 + $0x50] sm:$0xff]  ;;  %v383_v25 = vld [vmem:[#allocation7 + $0x58] sm:$0xff] }
  0x59   :  { %662 = vmatpush3.bf16.msra.mxu1 %v661_v17  ;;  %v706_v17 = vpack.c.bf16 %v377_v16, %v376_v15  ;;  %v384_v27 = vld [vmem:[#allocation7 + $0x60] sm:$0xff]  ;;  %v385_v28 = vld [vmem:[#allocation7 + $0x68] sm:$0xff] }
  0x5a   :  { %663 = vmatprep.subr.bf16.mxu1 %v844_v0 }
  0x5b   :  { %683 = vmatpush3.bf16.msra.mxu0 %v682_v47 }
  0x5c   :  { %684 = vmatprep.subr.bf16.mxu0 %v844_v0 }
  0x5d   :  { %665 = vmatpush3.bf16.msra.mxu1 %v664_v20  ;;  %v709_v20 = vpack.c.bf16 %v379_v19, %v378_v18 }
  0x5e   :  { %666 = vmatprep.subr.bf16.mxu1 %v844_v0 }
  0x5f   :  { %686 = vmatpush3.bf16.msra.mxu0 %v685_v50 }
  0x60   :  { %687 = vmatprep.subr.bf16.mxu0 %v844_v0 }
  0x61   :  { %668 = vmatpush3.bf16.msra.mxu1 %v667_v23  ;;  %v712_v23 = vpack.c.bf16 %v381_v22, %v380_v21 }
  0x62   :  { %669 = vmatprep.subr.bf16.mxu1 %v844_v0 }
  0x63   :  { %689 = vmatpush3.bf16.msra.mxu0 %v688_v53 }
  0x64   :  { %690 = vmatprep.subr.bf16.mxu0 %v844_v0 }
  0x65   :  { %671 = vmatpush3.bf16.msra.mxu1 %v670_v26  ;;  %v715_v26 = vpack.c.bf16 %v383_v25, %v382_v24 }
  0x66   :  { %672 = vmatprep.subr.bf16.mxu1 %v844_v0 }
  0x67   :  { %692 = vmatpush3.bf16.msra.mxu0 %v691_v56 }
  0x68   :  { %693 = vmatprep.subr.bf16.mxu0 %v844_v0 }
  0x69   :  { %674 = vmatpush3.bf16.msra.mxu1 %v673_v29  ;;  %v718_v29 = vpack.c.bf16 %v385_v28, %v384_v27 }
  0x6a   :  { %699 = vmatprep.subr.bf16.mxu1 %v844_v0 }
  0x6b   :  { %695 = vmatpush3.bf16.msra.mxu0 %v694_v59 }
  0x6c   :  { %696 = vmatprep.subr.bf16.mxu0 %v844_v0 }
  0x6f   :  { %698 = vmatpush3.bf16.msra.mxu0 %v697_v62 }
 0x122   :  { %v159_v31 = vpop.f32.mrb[0].mxu0 }
 0x123   :  { %v160_v32 = vadd.f32 %v473_v30, %v159_v31  ;;  %v542_v33 = vpop.f32.mrb[1].mxu0  ;;  %v386_v30 = vld [vmem:[#allocation7 + $0x70] sm:$0xff]  ;;  %v387_v31 = vld [vmem:[#allocation7 + $0x78] sm:$0xff] }
 0x124   :  { %v479_v33 = vld [vmem:[%s996_s4 + $0x1] ss:$0 sm:$0xff] }
 0x125   :  { %v475_v34 = vmul.f32 -1.442695, %v160_v32 }
 0x127   :  { %732 = vpow2.f32 %v475_v34 }
 0x131   :  { %v733_v35 = vpop.eup %732 }
 0x132   :  { %v166_v36 = vadd.f32 1.0, %v733_v35 }
 0x134   :  { %734 = vrcp.f32 %v166_v36 }
 0x13e   :  { %v735_v37 = vpop.eup %734 }
 0x13f   :  { %v169_v38 = vmul.f32 %v735_v37, %v160_v32  ;;  %v721_v32 = vpack.c.bf16 %v387_v31, %v386_v30 }
 0x141   :  { %576 = vmatmul.mubr.f32.vlgmr.msra.gmra.mrb[0].mxu1 %v169_v38 }
 0x142   :  { %645 = vmatprep.mubr.msk.f32.mxu1 %vm845_vm0, %v846_v1  ;;  %701 = vmatpush3.bf16.msra.mxu1 %v700_v11 }
 0x143   :  { %702 = vmatprep.subr.bf16.mxu1 %v844_v0 }
 0x146   :  { %704 = vmatpush3.bf16.msra.mxu1 %v703_v14 }
 0x147   :  { %705 = vmatprep.subr.bf16.mxu1 %v844_v0 }
 0x14a   :  { %707 = vmatpush3.bf16.msra.mxu1 %v706_v17 }
 0x14b   :  { %708 = vmatprep.subr.bf16.mxu1 %v844_v0 }
 0x14e   :  { %710 = vmatpush3.bf16.msra.mxu1 %v709_v20 }
 0x14f   :  { %711 = vmatprep.subr.bf16.mxu1 %v844_v0 }
 0x152   :  { %713 = vmatpush3.bf16.msra.mxu1 %v712_v23 }
 0x153   :  { %714 = vmatprep.subr.bf16.mxu1 %v844_v0 }
 0x156   :  { %716 = vmatpush3.bf16.msra.mxu1 %v715_v26 }
 0x157   :  { %717 = vmatprep.subr.bf16.mxu1 %v844_v0 }
 0x15a   :  { %719 = vmatpush3.bf16.msra.mxu1 %v718_v29 }
 0x15b   :  { %720 = vmatprep.subr.bf16.mxu1 %v844_v0  ;;  %v481_v0 = vld [vmem:[%s998_s6] ss:$0 sm:$0xff] }
 0x15e   :  { %722 = vmatpush3.bf16.msra.mxu1 %v721_v32 }
 0x214   :  { %v259_v1 = vpop.f32.mrb[0].mxu1 }
 0x215   :  { %v260_v2 = vadd.f32 %v476_v63, %v259_v1  ;;  %v577_v3 = vpop.f32.mrb[1].mxu1 }
 0x217   :  { %v477_v4 = vmul.f32 -1.442695, %v260_v2 }
 0x219   :  { %736 = vpow2.f32 %v477_v4 }
 0x223   :  { %v737_v5 = vpop.eup %736 }
 0x224   :  { %v266_v6 = vadd.f32 1.0, %v737_v5 }
 0x226   :  { %738 = vrcp.f32 %v266_v6 }
 0x230   :  { %v739_v7 = vpop.eup %738 }
 0x231   :  { %v269_v8 = vmul.f32 %v739_v7, %v260_v2 }
 0x233   :  { %611 = vmatmul.mubr.f32.vlgmr.msra.gmra.mrb[2].mxu0 %v269_v8 }
 0x306   :  { %v361_v34 = vpop.f32.mrb[2].mxu0 }
 0x307   :  { %v362_v35 = vadd.f32 %v479_v33, %v361_v34  ;;  %v612_v36 = vpop.f32.mrb[3].mxu0 }
 0x309   :  { %v480_v37 = vmul.f32 -1.442695, %v362_v35 }
 0x30b   :  { %740 = vpow2.f32 %v480_v37 }
 0x315   :  { %v741_v38 = vpop.eup %740 }
 0x316   :  { %v368_v39 = vadd.f32 1.0, %v741_v38 }
 0x318   :  { %742 = vrcp.f32 %v368_v39 }
 0x322   :  { %v743_v40 = vpop.eup %742 }
 0x323   :  { %v371_v41 = vmul.f32 %v743_v40, %v362_v35 }
 0x325   :  { %646 = vmatmul.mubr.f32.vlgmr.msra.gmra.mrb[2].mxu1 %v371_v41 }
 0x3f8   :  { %v461_v42 = vpop.f32.mrb[2].mxu1 }
 0x3f9   :  { %v462_v43 = vadd.f32 %v481_v0, %v461_v42  ;;  %v647_v44 = vpop.f32.mrb[3].mxu1 }
 0x3fb   :  { %465 = vst [vmem:[%s999_s7] sm:$0xff] %v462_v43 }
 0x3fc   :  { %470 = vsyncpa [#allocation3], 1 }
 0x3fd   :  { %471 = vsyncpa [#allocation5], 1 }
 0x3fe   :  { %472 = vsyncpa [#allocation8], 1 }

// kernel: _forward_impl.1
= control target key start
LH: loop header
LB: loop body
LE: loop exit
PB: predicated region body
PF: predicated region fallthrough
CT: control target
= control target key end

     0   :  { %12 = vsyncpa [#allocation3], 0  ;;  %s992_s0 = inlined_call_operand.hbm [shape: f32[8,16], index: 0, kind: input, shape index: {}]   ;;  %s993_s1 = inlined_call_operand.hbm [shape: f32[16,128], index: 1, kind: input, shape index: {}]   ;;  %s994_s2 = inlined_call_operand.vmem [shape: f32[1,128], index: 2, kind: input, shape index: {}]   ;;  %s995_s3 = inlined_call_operand.hbm [shape: f32[2,128,128], index: 3, kind: input, shape index: {}]   ;;  %s996_s4 = inlined_call_operand.vmem [shape: f32[2,1,128], index: 4, kind: input, shape index: {}]   ;;  %s997_s5 = inlined_call_operand.hbm [shape: f32[128,128], index: 5, kind: input, shape index: {}]   ;;  %s998_s6 = inlined_call_operand.vmem [shape: f32[1,128], index: 6, kind: input, shape index: {}]   ;;  %s999_s7 = inlined_call_operand.vmem [shape: f32[8,128], index: 7, kind: output, shape index: {}]  }
   0x1   :  { %13 = vsyncpa [#allocation5], 0 }
   0x2   :  { %14 = vsyncpa [#allocation8], 0  ;;  %s838_s24 = smov [#allocation4]   ;;  %s744_s28 = scalar_lea.hbm %s993_s1, 256 }
   0x3   :  { %s30_s25 = sshll.u32 %s838_s24, 4  ;;  %p745_p0 = scmp.ne.s32.totalorder %s993_s1, %s744_s28  ;;  %s31_s25 = int_to_ptr.vmem [resolvable:$true] %s30_s25 }
   0x4   :  { %p748_p1 = scmp.lt.u32.totalorder %s744_s28, %s993_s1 }
   0x6   :  { %p750_p2 = pnand %p748_p1, %p745_p0 }
   0x8   :  { %753 = shalt.err (!%p750_p2)
}
   0x9   :  { %s754_s10 = scalar_lea.vmem %s31_s25, 256  ;;  %p759_p4 = scmp.lt.s32.totalorder %s31_s25, %s31_s25 }
   0xa   :  { %p755_p3 = scmp.ne.s32.totalorder %s31_s25, %s754_s10  ;;  %p760_p5 = scmp.lt.s32.totalorder %s754_s10, %s754_s10 }
   0xc   :  { %p761_p6 = por %p760_p5, %p759_p4 }
   0xe   :  { %p762_p7 = pnand %p761_p6, %p755_p3 }
  0x10   :  { %765 = shalt.err (!%p762_p7)
}
  0x11   :  { %s839_s11 = smov 128   ;;  %s840_s12 = smov 8  }
  0x12   :  { %36 = dma.hbm_to_vmem [thread:$0]  %s993_s1, 256, %s31_s25, [#allocation5], %s839_s11, %s839_s11, %s840_s12  }
  0x13   :  { %s841_s15 = smov [#allocation2]   ;;  %s842_s17 = smov [#allocation6]  }
  0x14   :  { %s21_s16 = sshll.u32 %s841_s15, 4  ;;  %s44_s18 = sshll.u32 %s842_s17, 4  ;;  %s22_s16 = int_to_ptr.vmem [resolvable:$true] %s21_s16  ;;  %s45_s18 = int_to_ptr.vmem [resolvable:$true] %s44_s18 }
  0x15   :  { %s766_s21 = scalar_lea.hbm %s992_s0, 128 }
  0x16   :  { %p767_p8 = scmp.ne.s32.totalorder %s992_s0, %s766_s21  ;;  %p770_p9 = scmp.lt.u32.totalorder %s766_s21, %s992_s0 }
  0x18   :  { %p772_p10 = pnand %p770_p9, %p767_p8 }
  0x1a   :  { %775 = shalt.err (!%p772_p10)
}
  0x1b   :  { %s776_s1 = scalar_lea.vmem %s22_s16, 128  ;;  %p781_p12 = scmp.lt.s32.totalorder %s22_s16, %s22_s16 }
  0x1c   :  { %p777_p11 = scmp.ne.s32.totalorder %s22_s16, %s776_s1  ;;  %p782_p13 = scmp.lt.s32.totalorder %s776_s1, %s776_s1 }
  0x1e   :  { %p783_p0 = por %p782_p13, %p781_p12 }
  0x20   :  { %p784_p1 = pnand %p783_p0, %p777_p11 }
  0x22   :  { %787 = shalt.err (!%p784_p1)
}
  0x23   :  { %24 = dma.hbm_to_vmem [thread:$0]  %s992_s0, 128, %s22_s16, [#allocation3]  }
  0x24   :  { %s788_s30 = scalar_lea.hbm %s995_s3, 4096 }
  0x25   :  { %p789_p2 = scmp.ne.s32.totalorder %s995_s3, %s788_s30  ;;  %p792_p3 = scmp.lt.u32.totalorder %s788_s30, %s995_s3 }
  0x27   :  { %p794_p4 = pnand %p792_p3, %p789_p2 }
  0x29   :  { %797 = shalt.err (!%p794_p4)
}
  0x2a   :  { %s798_s14 = scalar_lea.vmem %s45_s18, 4096  ;;  %p803_p6 = scmp.lt.s32.totalorder %s45_s18, %s45_s18 }
  0x2b   :  { %p799_p5 = scmp.ne.s32.totalorder %s45_s18, %s798_s14  ;;  %p804_p7 = scmp.lt.s32.totalorder %s798_s14, %s798_s14 }
  0x2d   :  { %p805_p8 = por %p804_p7, %p803_p6 }
  0x2f   :  { %p806_p9 = pnand %p805_p8, %p799_p5 }
  0x31   :  { %809 = shalt.err (!%p806_p9)
}
  0x32   :  { %50 = dma.hbm_to_vmem [thread:$0]  %s995_s3, 4096, %s45_s18, [#allocation5], %s839_s11, %s839_s11, %s840_s12  }
  0x33   :  { %s843_s16 = smov [#allocation7]   ;;  %s810_s21 = scalar_lea.hbm %s997_s5, 2048 }
  0x34   :  { %s58_s17 = sshll.u32 %s843_s16, 4  ;;  %p811_p10 = scmp.ne.s32.totalorder %s997_s5, %s810_s21  ;;  %s59_s17 = int_to_ptr.vmem [resolvable:$true] %s58_s17 }
  0x35   :  { %p814_p11 = scmp.lt.u32.totalorder %s810_s21, %s997_s5 }
  0x37   :  { %p816_p12 = pnand %p814_p11, %p811_p10 }
  0x39   :  { %819 = shalt.err (!%p816_p12)
}
  0x3a   :  { %s820_s1 = scalar_lea.vmem %s59_s17, 2048  ;;  %p825_p0 = scmp.lt.s32.totalorder %s59_s17, %s59_s17 }
  0x3b   :  { %p821_p13 = scmp.ne.s32.totalorder %s59_s17, %s820_s1  ;;  %p826_p1 = scmp.lt.s32.totalorder %s820_s1, %s820_s1 }
  0x3d   :  { %p827_p2 = por %p826_p1, %p825_p0 }
  0x3f   :  { %p828_p3 = pnand %p827_p2, %p821_p13 }
  0x41   :  { %831 = shalt.err (!%p828_p3)
}
  0x42   :  { %64 = dma.hbm_to_vmem [thread:$0]  %s997_s5, 2048, %s59_s17, [#allocation8], %s839_s11, %s839_s11, %s840_s12  }
  0x43   :  { %832 = dma.done.wait [#allocation3], 128  }
  0x44   :  { %833 = vsyncadd [#allocation3], 4294967168 }
  0x45   :  { %834 = dma.done.wait [#allocation5], 4352  }
  0x46   :  { %835 = vsyncadd [#allocation5], 4294962944 }
  0x47   :  { %836 = dma.done.wait [#allocation8], 2048  }
  0x48   :  { %837 = vsyncadd [#allocation8], 4294965248  ;;  %v844_v0 = vmov 0.0|0.0   ;;  %vm845_vm0 = vmmov 0   ;;  %v846_v1 = vmov 0.0   ;;  %v80_v2 = vld [vmem:[#allocation4] sm:$0xff] }
  0x49   :  { %648 = vmatprep.subr.bf16.mxu0 %v844_v0  ;;  %540 = vmatprep.mubr.msk.f32.mxu0 %vm845_vm0, %v846_v1  ;;  %v81_v3 = vld [vmem:[#allocation4 + $0x8] sm:$0xff]  ;;  %v79_v5 = vld [vmem:[#allocation2] sm:$0xff]  ;;  %vm89_vm1 = vcmask 130048   ;;  %v170_v6 = vld [vmem:[#allocation6] sm:$0xff] }
  0x4a   :  { %651 = vmatprep.subr.bf16.mxu1 %v844_v0  ;;  %575 = vmatprep.mubr.msk.f32.mxu1 %vm845_vm0, %v846_v1  ;;  %v649_v4 = vpack.c.bf16 %v81_v3, %v80_v2  ;;  %v171_v7 = vld [vmem:[#allocation6 + $0x8] sm:$0xff]  ;;  %v172_v9 = vld [vmem:[#allocation6 + $0x10] sm:$0xff]  ;;  %v173_v10 = vld [vmem:[#allocation6 + $0x18] sm:$0xff] }
  0x4b   :  { %v652_v8 = vpack.c.bf16 %v171_v7, %v170_v6  ;;  %v655_v11 = vpack.c.bf16 %v173_v10, %v172_v9  ;;  %v174_v12 = vld [vmem:[#allocation6 + $0x20] sm:$0xff]  ;;  %v175_v13 = vld [vmem:[#allocation6 + $0x28] sm:$0xff]  ;;  %v176_v15 = vld [vmem:[#allocation6 + $0x30] sm:$0xff] }
  0x4c   :  { %650 = vmatpush3.bf16.msra.mxu0 %v649_v4  ;;  %v658_v14 = vpack.c.bf16 %v175_v13, %v174_v12  ;;  %v177_v16 = vld [vmem:[#allocation6 + $0x38] sm:$0xff]  ;;  %v178_v18 = vld [vmem:[#allocation6 + $0x40] sm:$0xff]  ;;  %v179_v19 = vld [vmem:[#allocation6 + $0x48] sm:$0xff] }
  0x4d   :  { %675 = vmatprep.subr.bf16.mxu0 %v844_v0  ;;  %653 = vmatpush3.bf16.msra.mxu1 %v652_v8  ;;  %v661_v17 = vpack.c.bf16 %v177_v16, %v176_v15  ;;  %v664_v20 = vpack.c.bf16 %v179_v19, %v178_v18  ;;  %v180_v21 = vld [vmem:[#allocation6 + $0x50] sm:$0xff]  ;;  %v181_v22 = vld [vmem:[#allocation6 + $0x58] sm:$0xff]  ;;  %v182_v24 = vld [vmem:[#allocation6 + $0x60] sm:$0xff] }
  0x4e   :  { %654 = vmatprep.subr.bf16.mxu1 %v844_v0  ;;  %v667_v23 = vpack.c.bf16 %v181_v22, %v180_v21  ;;  %v183_v25 = vld [vmem:[#allocation6 + $0x68] sm:$0xff]  ;;  %v184_v27 = vld [vmem:[#allocation6 + $0x70] sm:$0xff]  ;;  %v185_v28 = vld [vmem:[#allocation6 + $0x78] sm:$0xff] }
  0x4f   :  { %541 = vmatmul.mubr.msk.f32.vlgmr.msra.gmra.mrb[0].mxu0 %vm89_vm1, %v79_v5  ;;  %v670_v26 = vpack.c.bf16 %v183_v25, %v182_v24  ;;  %v673_v29 = vpack.c.bf16 %v185_v28, %v184_v27  ;;  %v473_v30 = vld [vmem:[%s994_s2] ss:$0 sm:$0xff]  ;;  %v271_v39 = vld [vmem:[#allocation6 + $0x80] sm:$0xff]  ;;  %v273_v42 = vld [vmem:[#allocation6 + $0x90] sm:$0xff] }
  0x50   :  { %610 = vmatprep.mubr.msk.f32.mxu0 %vm845_vm0, %v846_v1  ;;  %v272_v40 = vld [vmem:[#allocation6 + $0x88] sm:$0xff]  ;;  %v274_v43 = vld [vmem:[#allocation6 + $0x98] sm:$0xff]  ;;  %v275_v45 = vld [vmem:[#allocation6 + $0xa0] sm:$0xff] }
  0x51   :  { %656 = vmatpush3.bf16.msra.mxu1 %v655_v11  ;;  %v676_v41 = vpack.c.bf16 %v272_v40, %v271_v39  ;;  %v679_v44 = vpack.c.bf16 %v274_v43, %v273_v42  ;;  %v276_v46 = vld [vmem:[#allocation6 + $0xa8] sm:$0xff]  ;;  %v277_v48 = vld [vmem:[#allocation6 + $0xb0] sm:$0xff]  ;;  %v278_v49 = vld [vmem:[#allocation6 + $0xb8] sm:$0xff] }
  0x52   :  { %657 = vmatprep.subr.bf16.mxu1 %v844_v0  ;;  %v682_v47 = vpack.c.bf16 %v276_v46, %v275_v45  ;;  %v685_v50 = vpack.c.bf16 %v278_v49, %v277_v48  ;;  %v279_v51 = vld [vmem:[#allocation6 + $0xc0] sm:$0xff]  ;;  %v280_v52 = vld [vmem:[#allocation6 + $0xc8] sm:$0xff]  ;;  %v281_v54 = vld [vmem:[#allocation6 + $0xd0] sm:$0xff] }
  0x53   :  { %677 = vmatpush3.bf16.msra.mxu0 %v676_v41  ;;  %v688_v53 = vpack.c.bf16 %v280_v52, %v279_v51  ;;  %v282_v55 = vld [vmem:[#allocation6 + $0xd8] sm:$0xff]  ;;  %v283_v57 = vld [vmem:[#allocation6 + $0xe0] sm:$0xff]  ;;  %v284_v58 = vld [vmem:[#allocation6 + $0xe8] sm:$0xff] }
  0x54   :  { %678 = vmatprep.subr.bf16.mxu0 %v844_v0  ;;  %v691_v56 = vpack.c.bf16 %v282_v55, %v281_v54  ;;  %v694_v59 = vpack.c.bf16 %v284_v58, %v283_v57  ;;  %v285_v60 = vld [vmem:[#allocation6 + $0xf0] sm:$0xff]  ;;  %v286_v61 = vld [vmem:[#allocation6 + $0xf8] sm:$0xff]  ;;  %v476_v63 = vld [vmem:[%s996_s4] ss:$0 sm:$0xff] }
  0x55   :  { %659 = vmatpush3.bf16.msra.mxu1 %v658_v14  ;;  %v697_v62 = vpack.c.bf16 %v286_v61, %v285_v60  ;;  %v372_v9 = vld [vmem:[#allocation7] sm:$0xff]  ;;  %v373_v10 = vld [vmem:[#allocation7 + $0x8] sm:$0xff]  ;;  %v374_v12 = vld [vmem:[#allocation7 + $0x10] sm:$0xff] }
  0x56   :  { %660 = vmatprep.subr.bf16.mxu1 %v844_v0  ;;  %v700_v11 = vpack.c.bf16 %v373_v10, %v372_v9  ;;  %v375_v13 = vld [vmem:[#allocation7 + $0x18] sm:$0xff]  ;;  %v376_v15 = vld [vmem:[#allocation7 + $0x20] sm:$0xff]  ;;  %v377_v16 = vld [vmem:[#allocation7 + $0x28] sm:$0xff] }
  0x57   :  { %680 = vmatpush3.bf16.msra.mxu0 %v679_v44  ;;  %v703_v14 = vpack.c.bf16 %v375_v13, %v374_v12  ;;  %v378_v18 = vld [vmem:[#allocation7 + $0x30] sm:$0xff]  ;;  %v379_v19 = vld [vmem:[#allocation7 + $0x38] sm:$0xff]  ;;  %v380_v21 = vld [vmem:[#allocation7 + $0x40] sm:$0xff] }
  0x58   :  { %681 = vmatprep.subr.bf16.mxu0 %v844_v0  ;;  %v381_v22 = vld [vmem:[#allocation7 + $0x48] sm:$0xff]  ;;  %v382_v24 = vld [vmem:[#allocation7 + $0x50] sm:$0xff]  ;;  %v383_v25 = vld [vmem:[#allocation7 + $0x58] sm:$0xff] }
  0x59   :  { %662 = vmatpush3.bf16.msra.mxu1 %v661_v17  ;;  %v706_v17 = vpack.c.bf16 %v377_v16, %v376_v15  ;;  %v384_v27 = vld [vmem:[#allocation7 + $0x60] sm:$0xff]  ;;  %v385_v28 = vld [vmem:[#allocation7 + $0x68] sm:$0xff] }
  0x5a   :  { %663 = vmatprep.subr.bf16.mxu1 %v844_v0 }
  0x5b   :  { %683 = vmatpush3.bf16.msra.mxu0 %v682_v47 }
  0x5c   :  { %684 = vmatprep.subr.bf16.mxu0 %v844_v0 }
  0x5d   :  { %665 = vmatpush3.bf16.msra.mxu1 %v664_v20  ;;  %v709_v20 = vpack.c.bf16 %v379_v19, %v378_v18 }
  0x5e   :  { %666 = vmatprep.subr.bf16.mxu1 %v844_v0 }
  0x5f   :  { %686 = vmatpush3.bf16.msra.mxu0 %v685_v50 }
  0x60   :  { %687 = vmatprep.subr.bf16.mxu0 %v844_v0 }
  0x61   :  { %668 = vmatpush3.bf16.msra.mxu1 %v667_v23  ;;  %v712_v23 = vpack.c.bf16 %v381_v22, %v380_v21 }
  0x62   :  { %669 = vmatprep.subr.bf16.mxu1 %v844_v0 }
  0x63   :  { %689 = vmatpush3.bf16.msra.mxu0 %v688_v53 }
  0x64   :  { %690 = vmatprep.subr.bf16.mxu0 %v844_v0 }
  0x65   :  { %671 = vmatpush3.bf16.msra.mxu1 %v670_v26  ;;  %v715_v26 = vpack.c.bf16 %v383_v25, %v382_v24 }
  0x66   :  { %672 = vmatprep.subr.bf16.mxu1 %v844_v0 }
  0x67   :  { %692 = vmatpush3.bf16.msra.mxu0 %v691_v56 }
  0x68   :  { %693 = vmatprep.subr.bf16.mxu0 %v844_v0 }
  0x69   :  { %674 = vmatpush3.bf16.msra.mxu1 %v673_v29  ;;  %v718_v29 = vpack.c.bf16 %v385_v28, %v384_v27 }
  0x6a   :  { %699 = vmatprep.subr.bf16.mxu1 %v844_v0 }
  0x6b   :  { %695 = vmatpush3.bf16.msra.mxu0 %v694_v59 }
  0x6c   :  { %696 = vmatprep.subr.bf16.mxu0 %v844_v0 }
  0x6f   :  { %698 = vmatpush3.bf16.msra.mxu0 %v697_v62 }
 0x122   :  { %v159_v31 = vpop.f32.mrb[0].mxu0 }
 0x123   :  { %v160_v32 = vadd.f32 %v473_v30, %v159_v31  ;;  %v542_v33 = vpop.f32.mrb[1].mxu0  ;;  %v386_v30 = vld [vmem:[#allocation7 + $0x70] sm:$0xff]  ;;  %v387_v31 = vld [vmem:[#allocation7 + $0x78] sm:$0xff] }
 0x124   :  { %v479_v33 = vld [vmem:[%s996_s4 + $0x1] ss:$0 sm:$0xff] }
 0x125   :  { %v475_v34 = vmul.f32 -1.442695, %v160_v32 }
 0x127   :  { %732 = vpow2.f32 %v475_v34 }
 0x131   :  { %v733_v35 = vpop.eup %732 }
 0x132   :  { %v166_v36 = vadd.f32 1.0, %v733_v35 }
 0x134   :  { %734 = vrcp.f32 %v166_v36 }
 0x13e   :  { %v735_v37 = vpop.eup %734 }
 0x13f   :  { %v169_v38 = vmul.f32 %v735_v37, %v160_v32  ;;  %v721_v32 = vpack.c.bf16 %v387_v31, %v386_v30 }
 0x141   :  { %576 = vmatmul.mubr.f32.vlgmr.msra.gmra.mrb[0].mxu1 %v169_v38 }
 0x142   :  { %645 = vmatprep.mubr.msk.f32.mxu1 %vm845_vm0, %v846_v1  ;;  %701 = vmatpush3.bf16.msra.mxu1 %v700_v11 }
 0x143   :  { %702 = vmatprep.subr.bf16.mxu1 %v844_v0 }
 0x146   :  { %704 = vmatpush3.bf16.msra.mxu1 %v703_v14 }
 0x147   :  { %705 = vmatprep.subr.bf16.mxu1 %v844_v0 }
 0x14a   :  { %707 = vmatpush3.bf16.msra.mxu1 %v706_v17 }
 0x14b   :  { %708 = vmatprep.subr.bf16.mxu1 %v844_v0 }
 0x14e   :  { %710 = vmatpush3.bf16.msra.mxu1 %v709_v20 }
 0x14f   :  { %711 = vmatprep.subr.bf16.mxu1 %v844_v0 }
 0x152   :  { %713 = vmatpush3.bf16.msra.mxu1 %v712_v23 }
 0x153   :  { %714 = vmatprep.subr.bf16.mxu1 %v844_v0 }
 0x156   :  { %716 = vmatpush3.bf16.msra.mxu1 %v715_v26 }
 0x157   :  { %717 = vmatprep.subr.bf16.mxu1 %v844_v0 }
 0x15a   :  { %719 = vmatpush3.bf16.msra.mxu1 %v718_v29 }
 0x15b   :  { %720 = vmatprep.subr.bf16.mxu1 %v844_v0  ;;  %v481_v0 = vld [vmem:[%s998_s6] ss:$0 sm:$0xff] }
 0x15e   :  { %722 = vmatpush3.bf16.msra.mxu1 %v721_v32 }
 0x214   :  { %v259_v1 = vpop.f32.mrb[0].mxu1 }
 0x215   :  { %v260_v2 = vadd.f32 %v476_v63, %v259_v1  ;;  %v577_v3 = vpop.f32.mrb[1].mxu1 }
 0x217   :  { %v477_v4 = vmul.f32 -1.442695, %v260_v2 }
 0x219   :  { %736 = vpow2.f32 %v477_v4 }
 0x223   :  { %v737_v5 = vpop.eup %736 }
 0x224   :  { %v266_v6 = vadd.f32 1.0, %v737_v5 }
 0x226   :  { %738 = vrcp.f32 %v266_v6 }
 0x230   :  { %v739_v7 = vpop.eup %738 }
 0x231   :  { %v269_v8 = vmul.f32 %v739_v7, %v260_v2 }
 0x233   :  { %611 = vmatmul.mubr.f32.vlgmr.msra.gmra.mrb[2].mxu0 %v269_v8 }
 0x306   :  { %v361_v34 = vpop.f32.mrb[2].mxu0 }
 0x307   :  { %v362_v35 = vadd.f32 %v479_v33, %v361_v34  ;;  %v612_v36 = vpop.f32.mrb[3].mxu0 }
 0x309   :  { %v480_v37 = vmul.f32 -1.442695, %v362_v35 }
 0x30b   :  { %740 = vpow2.f32 %v480_v37 }
 0x315   :  { %v741_v38 = vpop.eup %740 }
 0x316   :  { %v368_v39 = vadd.f32 1.0, %v741_v38 }
 0x318   :  { %742 = vrcp.f32 %v368_v39 }
 0x322   :  { %v743_v40 = vpop.eup %742 }
 0x323   :  { %v371_v41 = vmul.f32 %v743_v40, %v362_v35 }
 0x325   :  { %646 = vmatmul.mubr.f32.vlgmr.msra.gmra.mrb[2].mxu1 %v371_v41 }
 0x3f8   :  { %v461_v42 = vpop.f32.mrb[2].mxu1 }
 0x3f9   :  { %v462_v43 = vadd.f32 %v481_v0, %v461_v42  ;;  %v647_v44 = vpop.f32.mrb[3].mxu1 }
 0x3fb   :  { %465 = vst [vmem:[%s999_s7] sm:$0xff] %v462_v43 }
 0x3fc   :  { %470 = vsyncpa [#allocation3], 1 }
 0x3fd   :  { %471 = vsyncpa [#allocation5], 1 }
 0x3fe   :  { %472 = vsyncpa [#allocation8], 1 }

</bundles_post_ra>
